<compile_context>
chip_gen: v7x
topology: tpu7x:2x2x1
jax: 0.10.0
libtpu: 0.0.40
codegen_flags: <defaults>
</compile_context>

<pallas_src>
import jax
import jax.numpy as jnp
from jax import lax
from jax.experimental import pallas as pl
from jax.experimental.pallas import tpu as pltpu

EPS = 1e-5  # nn.BatchNorm2d default eps


def _make_kernel(N, C, H, W):
    HW = H * W
    NC = N * C
    inv_count = 1.0 / float(N * HW)        # BN averages over N*H*W per channel
    offs = [(kh - 1, kw - 1) for kh in range(3) for kw in range(3)]

    def make_masks():
        """(1, HW) validity mask per (dh, dw) tap; None == all positions valid."""
        p = lax.broadcasted_iota(jnp.int32, (1, HW), 1)
        if W & (W - 1) == 0:               # power-of-two width: avoid int div/mod
            hh = jnp.right_shift(p, W.bit_length() - 1)
            ww = jnp.bitwise_and(p, W - 1)
        else:
            hh = p // W
            ww = p % W
        masks = {}
        for dh, dw in offs:
            terms = []
            if dh == -1:
                terms.append(hh >= 1)
            elif dh == 1:
                terms.append(hh <= H - 2)
            if dw == -1:
                terms.append(ww >= 1)
            elif dw == 1:
                terms.append(ww <= W - 2)
            m = None
            for t in terms:
                m = t if m is None else (m & t)
            masks[(dh, dw)] = m
        return masks

    def conv3x3(x8, w_ref, masks):
        """x8: (NC, HW) activation; w_ref: (NC, 9*NC) block-diagonal weights.
        Returns (NC, HW) f32 conv output (3x3, padding=1, stride=1)."""
        taps = []
        for dh, dw in offs:
            off = dh * W + dw
            tap = x8 if off == 0 else pltpu.roll(x8, (-off) % HW, axis=1)
            m = masks[(dh, dw)]
            if m is not None:
                tap = jnp.where(m, tap, 0.0)
            taps.append(tap)
        stacked = jnp.concatenate(taps, axis=0)          # (9*NC, HW), sublane-aligned
        return jnp.dot(w_ref[...], stacked,              # single MXU matmul per conv
                       preferred_element_type=jnp.float32)

    def bn_train(acc, g_col, b_col):
        """Training-mode BN; per-channel stats folded across the batch rows."""
        acc2 = acc * acc
        s_full, q_full = acc, acc2
        for k in range(1, N):                            # same channel sits k*C sublanes away
            s_full = s_full + pltpu.roll(acc, k * C, axis=0)
            q_full = q_full + pltpu.roll(acc2, k * C, axis=0)
        mean = jnp.sum(s_full, axis=-1, keepdims=True) * inv_count   # (NC, 1)
        ex2 = jnp.sum(q_full, axis=-1, keepdims=True) * inv_count    # (NC, 1)
        var = jnp.maximum(ex2 - mean * mean, 0.0)        # biased var, clamped >= 0
        scale = lax.rsqrt(var + EPS) * g_col
        shift = b_col - mean * scale
        return acc * scale + shift

    def kernel(x_ref, w1_ref, g1_ref, b1_ref, w2_ref, g2_ref, b2_ref, out_ref):
        masks = make_masks()
        x8 = x_ref[...]                                  # (NC, HW); also the shortcut

        # conv1 -> bn1 -> relu
        h = conv3x3(x8, w1_ref, masks)
        h = jnp.maximum(bn_train(h, g1_ref[...], b1_ref[...]), 0.0)

        # conv2 -> bn2 -> + identity shortcut -> relu; single lane-dense store
        h = conv3x3(h, w2_ref, masks)
        h = bn_train(h, g2_ref[...], b2_ref[...]) + x8
        out_ref[...] = jnp.maximum(h, 0.0)

    return kernel


def basic_block_32(x_nchw, params):
    """Forward pass of BasicBlock_32 (stride=1, in_planes == planes).

    x_nchw: (N, C, H, W) float32, PyTorch layout (returned in the same layout).
    params: (w1, g1, b1, w2, g2, b2); w*: (planes, in, 3, 3); g*/b*: (planes,).
    """
    w1, g1, b1, w2, g2, b2 = params
    N, C, H, W = x_nchw.shape
    planes = w1.shape[0]
    assert C == planes, "identity-shortcut config only (see TODO above)"
    HW = H * W
    NC = N * C

    # Channels onto the sublane axis: pure reshape, no transpose.
    x = x_nchw.reshape(NC, HW).astype(jnp.float32)

    def w_big(w):
        # (Cout, Cin, 3, 3) -> per-tap (Cin, Cout) -> batch-block-diagonal
        # (NC, 9*NC) so that conv = w_big @ stacked_taps inside the kernel.
        wt = jnp.transpose(w, (2, 3, 1, 0)).reshape(9, C, C).astype(jnp.float32)
        eye = jnp.eye(N, dtype=jnp.float32)
        return jnp.concatenate([jnp.kron(eye, wt[t].T) for t in range(9)], axis=1)

    def col(v):
        # Per-channel vector -> (NC, 1) column aligned with the sublane layout.
        return jnp.tile(v.astype(jnp.float32), (N,)).reshape(NC, 1)

    w1b, w2b = w_big(w1), w_big(w2)
    g1c, b1c, g2c, b2c = col(g1), col(b1), col(g2), col(b2)

    vmem = pl.BlockSpec(memory_space=pltpu.MemorySpace.VMEM)
    out = pl.pallas_call(
        _make_kernel(N, C, H, W),
        out_shape=jax.ShapeDtypeStruct((NC, HW), jnp.float32),
        in_specs=[vmem] * 7,
        out_specs=vmem,
    )(x, w1b, g1c, b1c, w2b, g2c, b2c)

    return out.reshape(N, C, H, W)


def _reference(x, params):
    """Pure-JAX reference (PyTorch training-mode BN) for the numerical self-check."""
    w1, g1, b1, w2, g2, b2 = params

    def conv(a, w):
        return lax.conv_general_dilated(
            a, w, window_strides=(1, 1), padding=((1, 1), (1, 1)),
            dimension_numbers=("NCHW", "OIHW", "NCHW"),
            precision=lax.Precision.HIGHEST)

    def bn(a, g, b):
        mean = jnp.mean(a, axis=(0, 2, 3), keepdims=True)
        var = jnp.mean((a - mean) ** 2, axis=(0, 2, 3), keepdims=True)
        return ((a - mean) / jnp.sqrt(var + EPS) * g.reshape(1, -1, 1, 1)
                + b.reshape(1, -1, 1, 1))

    h = jax.nn.relu(bn(conv(x, w1), g1, b1))
    h = bn(conv(h, w2), g2, b2) + x
    return jax.nn.relu(h)


if __name__ == "__main__":
    key = jax.random.PRNGKey(0)
    kx, kw1, kw2, kg1, kb1, kg2, kb2 = jax.random.split(key, 7)

    N, C, H, W = 2, 4, 16, 16        # small NCHW input, in_planes == planes == 4
    planes = 4

    x = jax.random.normal(kx, (N, C, H, W), jnp.float32)
    # Conv2d weights (PyTorch shape: out, in, kh, kw), bias=False in the module.
    w1 = 0.1 * jax.random.normal(kw1, (planes, C, 3, 3), jnp.float32)
    w2 = 0.1 * jax.random.normal(kw2, (planes, planes, 3, 3), jnp.float32)
    # BatchNorm2d affine params, perturbed from the default 1/0 init so the
    # scale/shift path is actually exercised by the self-check.
    g1 = 1.0 + 0.1 * jax.random.normal(kg1, (planes,), jnp.float32)
    b1 = 0.1 * jax.random.normal(kb1, (planes,), jnp.float32)
    g2 = 1.0 + 0.1 * jax.random.normal(kg2, (planes,), jnp.float32)
    b2 = 0.1 * jax.random.normal(kb2, (planes,), jnp.float32)

    params = (w1, g1, b1, w2, g2, b2)
    fwd = jax.jit(basic_block_32)
    out = fwd(x, params)
    jax.block_until_ready(out)
    assert out.shape == (N, planes, H, W)

    # Numerical self-check against a plain-XLA reference.  Tolerance leaves
    # headroom for MXU f32 matmul rounding; semantic errors (wrong tap, mask,
    # or weight mapping) would show up as O(0.1 .. 1) deviations.
    ref = _reference(x, params)
    max_err = float(jnp.max(jnp.abs(out - ref)))
    assert max_err < 2e-2, f"kernel mismatch: max abs err {max_err}"

    print("KERNEL_OK")
</pallas_src>

<mosaic_0001>
module attributes {stable_mosaic.version = 11 : i64} {
  func.func @kernel(%arg0: memref<8x256xf32, #tpu.memory_space<vmem>>, %arg1: memref<8x72xf32, #tpu.memory_space<vmem>>, %arg2: memref<8x1xf32, #tpu.memory_space<vmem>>, %arg3: memref<8x1xf32, #tpu.memory_space<vmem>>, %arg4: memref<8x72xf32, #tpu.memory_space<vmem>>, %arg5: memref<8x1xf32, #tpu.memory_space<vmem>>, %arg6: memref<8x1xf32, #tpu.memory_space<vmem>>, %arg7: memref<8x256xf32, #tpu.memory_space<vmem>>) attributes {dimension_semantics = [], scalar_prefetch = 0 : i64, scratch_operands = 0 : i64, tpu.core_type = #tpu.core_type<tc>} {
    %0 = tpu.iota {dimensions = array<i32: 1>} : vector<1x256xi32>
    %c4_i32 = arith.constant 4 : i32
    %1 = vector.broadcast %c4_i32 : i32 to vector<1x256xi32>
    %2 = arith.shrsi %0, %1 : vector<1x256xi32>
    %c15_i32 = arith.constant 15 : i32
    %3 = vector.broadcast %c15_i32 : i32 to vector<1x256xi32>
    %4 = arith.andi %0, %3 : vector<1x256xi32>
    %c1_i32 = arith.constant 1 : i32
    %5 = vector.broadcast %c1_i32 : i32 to vector<1x256xi32>
    %6 = arith.cmpi sge, %2, %5 : vector<1x256xi32>
    %c1_i32_0 = arith.constant 1 : i32
    %7 = vector.broadcast %c1_i32_0 : i32 to vector<1x256xi32>
    %8 = arith.cmpi sge, %4, %7 : vector<1x256xi32>
    %9 = arith.andi %6, %8 : vector<1x256xi1>
    %c1_i32_1 = arith.constant 1 : i32
    %10 = vector.broadcast %c1_i32_1 : i32 to vector<1x256xi32>
    %11 = arith.cmpi sge, %2, %10 : vector<1x256xi32>
    %c1_i32_2 = arith.constant 1 : i32
    %12 = vector.broadcast %c1_i32_2 : i32 to vector<1x256xi32>
    %13 = arith.cmpi sge, %2, %12 : vector<1x256xi32>
    %c14_i32 = arith.constant 14 : i32
    %14 = vector.broadcast %c14_i32 : i32 to vector<1x256xi32>
    %15 = arith.cmpi sle, %4, %14 : vector<1x256xi32>
    %16 = arith.andi %13, %15 : vector<1x256xi1>
    %c1_i32_3 = arith.constant 1 : i32
    %17 = vector.broadcast %c1_i32_3 : i32 to vector<1x256xi32>
    %18 = arith.cmpi sge, %4, %17 : vector<1x256xi32>
    %c14_i32_4 = arith.constant 14 : i32
    %19 = vector.broadcast %c14_i32_4 : i32 to vector<1x256xi32>
    %20 = arith.cmpi sle, %4, %19 : vector<1x256xi32>
    %c14_i32_5 = arith.constant 14 : i32
    %21 = vector.broadcast %c14_i32_5 : i32 to vector<1x256xi32>
    %22 = arith.cmpi sle, %2, %21 : vector<1x256xi32>
    %c1_i32_6 = arith.constant 1 : i32
    %23 = vector.broadcast %c1_i32_6 : i32 to vector<1x256xi32>
    %24 = arith.cmpi sge, %4, %23 : vector<1x256xi32>
    %25 = arith.andi %22, %24 : vector<1x256xi1>
    %c14_i32_7 = arith.constant 14 : i32
    %26 = vector.broadcast %c14_i32_7 : i32 to vector<1x256xi32>
    %27 = arith.cmpi sle, %2, %26 : vector<1x256xi32>
    %c14_i32_8 = arith.constant 14 : i32
    %28 = vector.broadcast %c14_i32_8 : i32 to vector<1x256xi32>
    %29 = arith.cmpi sle, %2, %28 : vector<1x256xi32>
    %c14_i32_9 = arith.constant 14 : i32
    %30 = vector.broadcast %c14_i32_9 : i32 to vector<1x256xi32>
    %31 = arith.cmpi sle, %4, %30 : vector<1x256xi32>
    %32 = arith.andi %29, %31 : vector<1x256xi1>
    %c0 = arith.constant 0 : index
    %c0_10 = arith.constant 0 : index
    %33 = vector.load %arg0[%c0, %c0_10] : memref<8x256xf32, #tpu.memory_space<vmem>>, vector<8x256xf32>
    %c17_i32 = arith.constant 17 : i32
    %34 = tpu.dynamic_rotate %33 by %c17_i32 dim 1 : vector<8x256xf32>, i32 -> vector<8x256xf32>
    %cst = arith.constant 0.000000e+00 : f32
    %35 = vector.shape_cast %9 : vector<1x256xi1> to vector<1x256xi1>
    %36 = vector.broadcast %35 : vector<1x256xi1> to vector<8x256xi1>
    %37 = vector.broadcast %cst : f32 to vector<8x256xf32>
    %38 = arith.select %36, %34, %37 : vector<8x256xi1>, vector<8x256xf32>
    %c16_i32 = arith.constant 16 : i32
    %39 = tpu.dynamic_rotate %33 by %c16_i32 dim 1 : vector<8x256xf32>, i32 -> vector<8x256xf32>
    %cst_11 = arith.constant 0.000000e+00 : f32
    %40 = vector.shape_cast %11 : vector<1x256xi1> to vector<1x256xi1>
    %41 = vector.broadcast %40 : vector<1x256xi1> to vector<8x256xi1>
    %42 = vector.broadcast %cst_11 : f32 to vector<8x256xf32>
    %43 = arith.select %41, %39, %42 : vector<8x256xi1>, vector<8x256xf32>
    %c15_i32_12 = arith.constant 15 : i32
    %44 = tpu.dynamic_rotate %33 by %c15_i32_12 dim 1 : vector<8x256xf32>, i32 -> vector<8x256xf32>
    %cst_13 = arith.constant 0.000000e+00 : f32
    %45 = vector.shape_cast %16 : vector<1x256xi1> to vector<1x256xi1>
    %46 = vector.broadcast %45 : vector<1x256xi1> to vector<8x256xi1>
    %47 = vector.broadcast %cst_13 : f32 to vector<8x256xf32>
    %48 = arith.select %46, %44, %47 : vector<8x256xi1>, vector<8x256xf32>
    %c1_i32_14 = arith.constant 1 : i32
    %49 = tpu.dynamic_rotate %33 by %c1_i32_14 dim 1 : vector<8x256xf32>, i32 -> vector<8x256xf32>
    %cst_15 = arith.constant 0.000000e+00 : f32
    %50 = vector.shape_cast %18 : vector<1x256xi1> to vector<1x256xi1>
    %51 = vector.broadcast %50 : vector<1x256xi1> to vector<8x256xi1>
    %52 = vector.broadcast %cst_15 : f32 to vector<8x256xf32>
    %53 = arith.select %51, %49, %52 : vector<8x256xi1>, vector<8x256xf32>
    %c255_i32 = arith.constant 255 : i32
    %54 = tpu.dynamic_rotate %33 by %c255_i32 dim 1 : vector<8x256xf32>, i32 -> vector<8x256xf32>
    %cst_16 = arith.constant 0.000000e+00 : f32
    %55 = vector.shape_cast %20 : vector<1x256xi1> to vector<1x256xi1>
    %56 = vector.broadcast %55 : vector<1x256xi1> to vector<8x256xi1>
    %57 = vector.broadcast %cst_16 : f32 to vector<8x256xf32>
    %58 = arith.select %56, %54, %57 : vector<8x256xi1>, vector<8x256xf32>
    %c241_i32 = arith.constant 241 : i32
    %59 = tpu.dynamic_rotate %33 by %c241_i32 dim 1 : vector<8x256xf32>, i32 -> vector<8x256xf32>
    %cst_17 = arith.constant 0.000000e+00 : f32
    %60 = vector.shape_cast %25 : vector<1x256xi1> to vector<1x256xi1>
    %61 = vector.broadcast %60 : vector<1x256xi1> to vector<8x256xi1>
    %62 = vector.broadcast %cst_17 : f32 to vector<8x256xf32>
    %63 = arith.select %61, %59, %62 : vector<8x256xi1>, vector<8x256xf32>
    %c240_i32 = arith.constant 240 : i32
    %64 = tpu.dynamic_rotate %33 by %c240_i32 dim 1 : vector<8x256xf32>, i32 -> vector<8x256xf32>
    %cst_18 = arith.constant 0.000000e+00 : f32
    %65 = vector.shape_cast %27 : vector<1x256xi1> to vector<1x256xi1>
    %66 = vector.broadcast %65 : vector<1x256xi1> to vector<8x256xi1>
    %67 = vector.broadcast %cst_18 : f32 to vector<8x256xf32>
    %68 = arith.select %66, %64, %67 : vector<8x256xi1>, vector<8x256xf32>
    %c239_i32 = arith.constant 239 : i32
    %69 = tpu.dynamic_rotate %33 by %c239_i32 dim 1 : vector<8x256xf32>, i32 -> vector<8x256xf32>
    %cst_19 = arith.constant 0.000000e+00 : f32
    %70 = vector.shape_cast %32 : vector<1x256xi1> to vector<1x256xi1>
    %71 = vector.broadcast %70 : vector<1x256xi1> to vector<8x256xi1>
    %72 = vector.broadcast %cst_19 : f32 to vector<8x256xf32>
    %73 = arith.select %71, %69, %72 : vector<8x256xi1>, vector<8x256xf32>
    %74 = tpu.concatenate %38, %43, %48, %53, %33, %58, %63, %68, %73 in 0 : vector<8x256xf32>, vector<8x256xf32>, vector<8x256xf32>, vector<8x256xf32>, vector<8x256xf32>, vector<8x256xf32>, vector<8x256xf32>, vector<8x256xf32>, vector<8x256xf32> -> vector<72x256xf32>
    %c0_20 = arith.constant 0 : index
    %c0_21 = arith.constant 0 : index
    %75 = vector.load %arg1[%c0_20, %c0_21] : memref<8x72xf32, #tpu.memory_space<vmem>>, vector<8x72xf32>
    %cst_22 = arith.constant dense<0.000000e+00> : vector<8x256xf32>
    %76 = tpu.matmul %75, %74, %cst_22 {dimension_numbers = #tpu.dot_dimension_numbers<[1], [0], [0], [1], [0, 0, 1, 1], [], []>} : vector<8x72xf32>, vector<72x256xf32>, vector<8x256xf32> -> vector<8x256xf32>
    %c0_23 = arith.constant 0 : index
    %c0_24 = arith.constant 0 : index
    %77 = vector.load %arg2[%c0_23, %c0_24] : memref<8x1xf32, #tpu.memory_space<vmem>>, vector<8x1xf32>
    %c0_25 = arith.constant 0 : index
    %c0_26 = arith.constant 0 : index
    %78 = vector.load %arg3[%c0_25, %c0_26] : memref<8x1xf32, #tpu.memory_space<vmem>>, vector<8x1xf32>
    %79 = arith.mulf %76, %76 : vector<8x256xf32>
    %c4_i32_27 = arith.constant 4 : i32
    %80 = tpu.dynamic_rotate %76 by %c4_i32_27 dim 0 : vector<8x256xf32>, i32 -> vector<8x256xf32>
    %81 = arith.addf %76, %80 : vector<8x256xf32>
    %c4_i32_28 = arith.constant 4 : i32
    %82 = tpu.dynamic_rotate %79 by %c4_i32_28 dim 0 : vector<8x256xf32>, i32 -> vector<8x256xf32>
    %83 = arith.addf %79, %82 : vector<8x256xf32>
    %cst_29 = arith.constant dense<0.000000e+00> : vector<8xf32>
    %84 = vector.multi_reduction <add>, %81, %cst_29 [1] : vector<8x256xf32> to vector<8xf32>
    %85 = vector.shape_cast %84 : vector<8xf32> to vector<8x1xf32>
    %cst_30 = arith.constant 0.001953125 : f32
    %86 = vector.broadcast %cst_30 : f32 to vector<8x1xf32>
    %87 = arith.mulf %85, %86 : vector<8x1xf32>
    %cst_31 = arith.constant dense<0.000000e+00> : vector<8xf32>
    %88 = vector.multi_reduction <add>, %83, %cst_31 [1] : vector<8x256xf32> to vector<8xf32>
    %89 = vector.shape_cast %88 : vector<8xf32> to vector<8x1xf32>
    %cst_32 = arith.constant 0.001953125 : f32
    %90 = vector.broadcast %cst_32 : f32 to vector<8x1xf32>
    %91 = arith.mulf %89, %90 : vector<8x1xf32>
    %92 = arith.mulf %87, %87 : vector<8x1xf32>
    %93 = arith.subf %91, %92 : vector<8x1xf32>
    %cst_33 = arith.constant 0.000000e+00 : f32
    %94 = vector.broadcast %cst_33 : f32 to vector<8x1xf32>
    %95 = arith.maximumf %93, %94 : vector<8x1xf32>
    %cst_34 = arith.constant 9.99999974E-6 : f32
    %96 = vector.broadcast %cst_34 : f32 to vector<8x1xf32>
    %97 = arith.addf %95, %96 : vector<8x1xf32>
    %98 = math.rsqrt %97 : vector<8x1xf32>
    %99 = arith.mulf %98, %77 : vector<8x1xf32>
    %100 = arith.mulf %87, %99 : vector<8x1xf32>
    %101 = arith.subf %78, %100 : vector<8x1xf32>
    %102 = vector.broadcast %99 : vector<8x1xf32> to vector<8x256xf32>
    %103 = arith.mulf %76, %102 : vector<8x256xf32>
    %104 = vector.broadcast %101 : vector<8x1xf32> to vector<8x256xf32>
    %105 = arith.addf %103, %104 : vector<8x256xf32>
    %cst_35 = arith.constant 0.000000e+00 : f32
    %106 = vector.broadcast %cst_35 : f32 to vector<8x256xf32>
    %107 = arith.maximumf %105, %106 : vector<8x256xf32>
    %c17_i32_36 = arith.constant 17 : i32
    %108 = tpu.dynamic_rotate %107 by %c17_i32_36 dim 1 : vector<8x256xf32>, i32 -> vector<8x256xf32>
    %cst_37 = arith.constant 0.000000e+00 : f32
    %109 = vector.shape_cast %9 : vector<1x256xi1> to vector<1x256xi1>
    %110 = vector.broadcast %109 : vector<1x256xi1> to vector<8x256xi1>
    %111 = vector.broadcast %cst_37 : f32 to vector<8x256xf32>
    %112 = arith.select %110, %108, %111 : vector<8x256xi1>, vector<8x256xf32>
    %c16_i32_38 = arith.constant 16 : i32
    %113 = tpu.dynamic_rotate %107 by %c16_i32_38 dim 1 : vector<8x256xf32>, i32 -> vector<8x256xf32>
    %cst_39 = arith.constant 0.000000e+00 : f32
    %114 = vector.shape_cast %11 : vector<1x256xi1> to vector<1x256xi1>
    %115 = vector.broadcast %114 : vector<1x256xi1> to vector<8x256xi1>
    %116 = vector.broadcast %cst_39 : f32 to vector<8x256xf32>
    %117 = arith.select %115, %113, %116 : vector<8x256xi1>, vector<8x256xf32>
    %c15_i32_40 = arith.constant 15 : i32
    %118 = tpu.dynamic_rotate %107 by %c15_i32_40 dim 1 : vector<8x256xf32>, i32 -> vector<8x256xf32>
    %cst_41 = arith.constant 0.000000e+00 : f32
    %119 = vector.shape_cast %16 : vector<1x256xi1> to vector<1x256xi1>
    %120 = vector.broadcast %119 : vector<1x256xi1> to vector<8x256xi1>
    %121 = vector.broadcast %cst_41 : f32 to vector<8x256xf32>
    %122 = arith.select %120, %118, %121 : vector<8x256xi1>, vector<8x256xf32>
    %c1_i32_42 = arith.constant 1 : i32
    %123 = tpu.dynamic_rotate %107 by %c1_i32_42 dim 1 : vector<8x256xf32>, i32 -> vector<8x256xf32>
    %cst_43 = arith.constant 0.000000e+00 : f32
    %124 = vector.shape_cast %18 : vector<1x256xi1> to vector<1x256xi1>
    %125 = vector.broadcast %124 : vector<1x256xi1> to vector<8x256xi1>
    %126 = vector.broadcast %cst_43 : f32 to vector<8x256xf32>
    %127 = arith.select %125, %123, %126 : vector<8x256xi1>, vector<8x256xf32>
    %c255_i32_44 = arith.constant 255 : i32
    %128 = tpu.dynamic_rotate %107 by %c255_i32_44 dim 1 : vector<8x256xf32>, i32 -> vector<8x256xf32>
    %cst_45 = arith.constant 0.000000e+00 : f32
    %129 = vector.shape_cast %20 : vector<1x256xi1> to vector<1x256xi1>
    %130 = vector.broadcast %129 : vector<1x256xi1> to vector<8x256xi1>
    %131 = vector.broadcast %cst_45 : f32 to vector<8x256xf32>
    %132 = arith.select %130, %128, %131 : vector<8x256xi1>, vector<8x256xf32>
    %c241_i32_46 = arith.constant 241 : i32
    %133 = tpu.dynamic_rotate %107 by %c241_i32_46 dim 1 : vector<8x256xf32>, i32 -> vector<8x256xf32>
    %cst_47 = arith.constant 0.000000e+00 : f32
    %134 = vector.shape_cast %25 : vector<1x256xi1> to vector<1x256xi1>
    %135 = vector.broadcast %134 : vector<1x256xi1> to vector<8x256xi1>
    %136 = vector.broadcast %cst_47 : f32 to vector<8x256xf32>
    %137 = arith.select %135, %133, %136 : vector<8x256xi1>, vector<8x256xf32>
    %c240_i32_48 = arith.constant 240 : i32
    %138 = tpu.dynamic_rotate %107 by %c240_i32_48 dim 1 : vector<8x256xf32>, i32 -> vector<8x256xf32>
    %cst_49 = arith.constant 0.000000e+00 : f32
    %139 = vector.shape_cast %27 : vector<1x256xi1> to vector<1x256xi1>
    %140 = vector.broadcast %139 : vector<1x256xi1> to vector<8x256xi1>
    %141 = vector.broadcast %cst_49 : f32 to vector<8x256xf32>
    %142 = arith.select %140, %138, %141 : vector<8x256xi1>, vector<8x256xf32>
    %c239_i32_50 = arith.constant 239 : i32
    %143 = tpu.dynamic_rotate %107 by %c239_i32_50 dim 1 : vector<8x256xf32>, i32 -> vector<8x256xf32>
    %cst_51 = arith.constant 0.000000e+00 : f32
    %144 = vector.shape_cast %32 : vector<1x256xi1> to vector<1x256xi1>
    %145 = vector.broadcast %144 : vector<1x256xi1> to vector<8x256xi1>
    %146 = vector.broadcast %cst_51 : f32 to vector<8x256xf32>
    %147 = arith.select %145, %143, %146 : vector<8x256xi1>, vector<8x256xf32>
    %148 = tpu.concatenate %112, %117, %122, %127, %107, %132, %137, %142, %147 in 0 : vector<8x256xf32>, vector<8x256xf32>, vector<8x256xf32>, vector<8x256xf32>, vector<8x256xf32>, vector<8x256xf32>, vector<8x256xf32>, vector<8x256xf32>, vector<8x256xf32> -> vector<72x256xf32>
    %c0_52 = arith.constant 0 : index
    %c0_53 = arith.constant 0 : index
    %149 = vector.load %arg4[%c0_52, %c0_53] : memref<8x72xf32, #tpu.memory_space<vmem>>, vector<8x72xf32>
    %cst_54 = arith.constant dense<0.000000e+00> : vector<8x256xf32>
    %150 = tpu.matmul %149, %148, %cst_54 {dimension_numbers = #tpu.dot_dimension_numbers<[1], [0], [0], [1], [0, 0, 1, 1], [], []>} : vector<8x72xf32>, vector<72x256xf32>, vector<8x256xf32> -> vector<8x256xf32>
    %c0_55 = arith.constant 0 : index
    %c0_56 = arith.constant 0 : index
    %151 = vector.load %arg5[%c0_55, %c0_56] : memref<8x1xf32, #tpu.memory_space<vmem>>, vector<8x1xf32>
    %c0_57 = arith.constant 0 : index
    %c0_58 = arith.constant 0 : index
    %152 = vector.load %arg6[%c0_57, %c0_58] : memref<8x1xf32, #tpu.memory_space<vmem>>, vector<8x1xf32>
    %153 = arith.mulf %150, %150 : vector<8x256xf32>
    %c4_i32_59 = arith.constant 4 : i32
    %154 = tpu.dynamic_rotate %150 by %c4_i32_59 dim 0 : vector<8x256xf32>, i32 -> vector<8x256xf32>
    %155 = arith.addf %150, %154 : vector<8x256xf32>
    %c4_i32_60 = arith.constant 4 : i32
    %156 = tpu.dynamic_rotate %153 by %c4_i32_60 dim 0 : vector<8x256xf32>, i32 -> vector<8x256xf32>
    %157 = arith.addf %153, %156 : vector<8x256xf32>
    %cst_61 = arith.constant dense<0.000000e+00> : vector<8xf32>
    %158 = vector.multi_reduction <add>, %155, %cst_61 [1] : vector<8x256xf32> to vector<8xf32>
    %159 = vector.shape_cast %158 : vector<8xf32> to vector<8x1xf32>
    %cst_62 = arith.constant 0.001953125 : f32
    %160 = vector.broadcast %cst_62 : f32 to vector<8x1xf32>
    %161 = arith.mulf %159, %160 : vector<8x1xf32>
    %cst_63 = arith.constant dense<0.000000e+00> : vector<8xf32>
    %162 = vector.multi_reduction <add>, %157, %cst_63 [1] : vector<8x256xf32> to vector<8xf32>
    %163 = vector.shape_cast %162 : vector<8xf32> to vector<8x1xf32>
    %cst_64 = arith.constant 0.001953125 : f32
    %164 = vector.broadcast %cst_64 : f32 to vector<8x1xf32>
    %165 = arith.mulf %163, %164 : vector<8x1xf32>
    %166 = arith.mulf %161, %161 : vector<8x1xf32>
    %167 = arith.subf %165, %166 : vector<8x1xf32>
    %cst_65 = arith.constant 0.000000e+00 : f32
    %168 = vector.broadcast %cst_65 : f32 to vector<8x1xf32>
    %169 = arith.maximumf %167, %168 : vector<8x1xf32>
    %cst_66 = arith.constant 9.99999974E-6 : f32
    %170 = vector.broadcast %cst_66 : f32 to vector<8x1xf32>
    %171 = arith.addf %169, %170 : vector<8x1xf32>
    %172 = math.rsqrt %171 : vector<8x1xf32>
    %173 = arith.mulf %172, %151 : vector<8x1xf32>
    %174 = arith.mulf %161, %173 : vector<8x1xf32>
    %175 = arith.subf %152, %174 : vector<8x1xf32>
    %176 = vector.broadcast %173 : vector<8x1xf32> to vector<8x256xf32>
    %177 = arith.mulf %150, %176 : vector<8x256xf32>
    %178 = vector.broadcast %175 : vector<8x1xf32> to vector<8x256xf32>
    %179 = arith.addf %177, %178 : vector<8x256xf32>
    %180 = arith.addf %179, %33 : vector<8x256xf32>
    %cst_67 = arith.constant 0.000000e+00 : f32
    %181 = vector.broadcast %cst_67 : f32 to vector<8x256xf32>
    %182 = arith.maximumf %180, %181 : vector<8x256xf32>
    %c0_68 = arith.constant 0 : index
    %c0_69 = arith.constant 0 : index
    %183 = vector.load %arg7[%c0_68, %c0_69] : memref<8x256xf32, #tpu.memory_space<vmem>>, vector<8x256xf32>
    tpu.vector_store %arg7[%c0_68, %c0_69], %182 {strides = array<i32>} : memref<8x256xf32, #tpu.memory_space<vmem>>, vector<8x256xf32>,
    return
  }
}

</mosaic_0001>

<bundles_post_ra>
// kernel: tile.23
= control target key start
LH: loop header
LB: loop body
LE: loop exit
PB: predicated region body
PF: predicated region fallthrough
CT: control target
= control target key end

     0   :  { %s22_s0 = inlined_call_operand.vmem [shape: f32[4], index: 0, kind: input, shape index: {}]   ;;  %s23_s1 = inlined_call_operand.vmem [shape: f32[2,4], index: 1, kind: output, shape index: {}]  }
   0x1   :  { %v4_v0 = vld [vmem:[%s22_s0] ss:$0 sm:$0xff] }
   0x2   :  { %5 = vst [vmem:[%s23_s1] sm:$0x3] %v4_v0 }

// kernel: tile.0
= control target key start
LH: loop header
LB: loop body
LE: loop exit
PB: predicated region body
PF: predicated region fallthrough
CT: control target
= control target key end

     0   :  { %s34_s8 = smov 125   ;;  %vm7_vm0 = vcmask 7168   ;;  %s35_s11 = smov 126   ;;  %s61_s0 = inlined_call_operand.vmem [shape: f32[2,4], index: 0, kind: input, shape index: {}]   ;;  %s62_s1 = inlined_call_operand.vmem [shape: f32[8,1], index: 1, kind: output, shape index: {}]  }
   0x1   :  { %v4_v0 = vld [vmem:[%s61_s0] sm:$0x3]  ;;  %s33_s0 = smov 127  }
   0x2   :  { %5 = vst [vmem:[#allocation0] sm:$0x3] %v4_v0 }
   0x9   :  { %v9_v1 = vld [vmem:[#allocation0] sm:$0x3]  }
   0xa   :  { %v21_v2 = vld [vmem:[#allocation0] sm:$0x3]   ;;  %10 = vrot.lane.b32.xlu0 %v9_v1, %s33_s0 }
   0xb   :  { %22 = vrot.lane.b32.xlu1 %v21_v2, %s34_s8  ;;  %v6_v3 = vld [vmem:[#allocation0] sm:$0x3]  }
   0xc   :  { %v15_v4 = vld [vmem:[#allocation0] sm:$0x3]   ;;  %8 = vst.msk [vmem:[%s62_s1] ss:$4 sm:$0x3] %vm7_vm0, %v6_v3  }
   0xe   :  { %16 = vrot.lane.b32.xlu0 %v15_v4, %s35_s11 }
  0x7c   :  { %v11_v5 = vpop.permute.xlu0 %10  }
  0x7d   :  { %v23_v6 = vpop.permute.xlu1 %22   ;;  %27 = vst.msk [vmem:[%s62_s1 + $0x1] ss:$4 sm:$0x3] %vm7_vm0, %v11_v5  }
  0x7e   :  { %29 = vst.msk [vmem:[%s62_s1 + $0x3] ss:$4 sm:$0x3] %vm7_vm0, %v23_v6  }
  0x80   :  { %v17_v7 = vpop.permute.xlu0 %16  }
  0x81   :  { %28 = vst.msk [vmem:[%s62_s1 + $0x2] ss:$4 sm:$0x3] %vm7_vm0, %v17_v7  }

// kernel: basic_block_32.1
= control target key start
LH: loop header
LB: loop body
LE: loop exit
PB: predicated region body
PF: predicated region fallthrough
CT: control target
= control target key end

     0   :  { %s635_s28 = smov 15   ;;  %s636_s29 = smov 17   ;;  %v643_v3 = vmov 0.0   ;;  %v26_v4 = vlaneseq  ;;  %s1003_s0 = inlined_call_operand.vmem [shape: f32[8,256], index: 0, kind: input, shape index: {}]   ;;  %s1004_s1 = inlined_call_operand.vmem [shape: f32[8,72], index: 1, kind: input, shape index: {}]   ;;  %s1005_s2 = inlined_call_operand.vmem [shape: f32[8,1], index: 2, kind: input, shape index: {}]   ;;  %s1006_s3 = inlined_call_operand.vmem [shape: f32[8,1], index: 3, kind: input, shape index: {}]   ;;  %s1007_s4 = inlined_call_operand.vmem [shape: f32[8,72], index: 4, kind: input, shape index: {}]   ;;  %s1008_s5 = inlined_call_operand.vmem [shape: f32[8,1], index: 5, kind: input, shape index: {}]   ;;  %s1009_s6 = inlined_call_operand.vmem [shape: f32[8,1], index: 6, kind: input, shape index: {}]   ;;  %s1010_s7 = inlined_call_operand.vmem [shape: f32[8,256], index: 7, kind: output, shape index: {}]  }
   0x1   :  { %v689_v0 = vld [vmem:[%s1003_s0] sm:$0xff]  ;;  %v694_v1 = vld [vmem:[%s1003_s0 + $0x8] sm:$0xff]  ;;  %s637_s30 = smov 1   ;;  %s638_s8 = smov 16   ;;  %224 = vmatprep.mubr.f32.mxu0 %v643_v3  ;;  %407 = vmatprep.mubr.f32.mxu1 %v643_v3 }
   0x2   :  { %v569_v2 = vpack.i.bf16 %v694_v1, %v689_v0  ;;  %s639_s9 = smov 127   ;;  %s640_s0 = smov 113   ;;  %v709_v5 = vand.u32 127, %v26_v4 }
   0x3   :  { %s641_s10 = smov 112   ;;  %s642_s11 = smov 111  }
   0x4   :  { %570 = vrot.lane.b32.xlu1 %v569_v2, %s635_s28  ;;  %560 = vrot.lane.b32.xlu0 %v569_v2, %s636_s29  ;;  %v28_v6 = vadd.s32 128, %v709_v5  ;;  %v29_v9 = vshra.s32 %v709_v5, 4  ;;  %v31_v10 = vand.u32 15, %v709_v5  ;;  %vm1013_vm5 = vcmp.lt.s32.totalorder %v709_v5, 15 }
   0x5   :  { %vm1015_vm6 = vcmp.lt.s32.totalorder %v709_v5, 17  ;;  %vm1012_vm8 = vcmp.lt.s32.totalorder %v709_v5, 1  ;;  %vm1011_vm9 = vcmp.lt.s32.totalorder %v709_v5, 16  ;;  %vm1014_vm13 = vcmp.lt.s32.totalorder %v709_v5, 127 }
   0x6   :  { %v30_v7 = vshra.s32 %v28_v6, 4  ;;  %v32_v8 = vand.u32 15, %v28_v6  ;;  %vm724_vm2 = vcmp.ge.s32.totalorder %v29_v9, 1  ;;  %vm728_vm3 = vcmp.ge.s32.totalorder %v31_v10, 1 }
   0x7   :  { %vm37_vm10 = vmand %vm724_vm2, %vm728_vm3  ;;  %vm748_vm11 = vcmp.le.s32.totalorder %v31_v10, 14 }
   0x8   :  { %575 = vrot.lane.b32.xlu1 %v569_v2, %s637_s30  ;;  %565 = vrot.lane.b32.xlu0 %v569_v2, %s638_s8  ;;  %vm714_vm0 = vcmp.ge.s32.totalorder %v30_v7, 1  ;;  %vm718_vm1 = vcmp.ge.s32.totalorder %v32_v8, 1  ;;  %vm738_vm7 = vcmp.le.s32.totalorder %v32_v8, 14  ;;  %vm782_vm15 = vmpackc.low %vm724_vm2, %vm37_vm10  ;;  %vm803_vm10 = vcmp.le.s32.totalorder %v30_v7, 14 }
   0x9   :  { %vm38_vm4 = vmand %vm714_vm0, %vm718_vm1 }
   0xa   :  { %vm754_vm12 = vmpackc.low %vm714_vm0, %vm38_vm4  ;;  %vm1016_vm4 = vcmp.lt.s32.totalorder %v709_v5, 113 }
   0xb   :  { %vm42_vm14 = vmand %vm714_vm0, %vm738_vm7 }
   0xc   :  { %580 = vrot.lane.b32.xlu0 %v569_v2, %s639_s9  ;;  %585 = vrot.lane.b32.xlu1 %v569_v2, %s640_s0  ;;  %vm41_vm0 = vmand %vm724_vm2, %vm748_vm11 }
  0x10   :  { %590 = vrot.lane.b32.xlu0 %v569_v2, %s641_s10  ;;  %142 = vrot.lane.b32.xlu1 %v689_v0, %s642_s11 }
  0x14   :  { %144 = vrot.lane.b32.xlu0 %v694_v1, %s642_s11 }
  0x76   :  { %v571_v13 = vpop.permute.xlu1 %570  ;;  %v561_v14 = vpop.permute.xlu0 %560 }
  0x77   :  { %v573_v17 = vunpack.i.h.bf16 %v571_v13  ;;  %v572_v18 = vunpack.i.l.bf16 %v571_v13  ;;  %v563_v19 = vunpack.i.h.bf16 %v561_v14  ;;  %v562_v20 = vunpack.i.l.bf16 %v561_v14  ;;  %v155_v13 = vld [vmem:[%s1004_s1] sm:$0xff] }
  0x79   :  { %v82_v30 = vsel %vm1013_vm5, %v572_v18, %v573_v17  ;;  %v56_v31 = vsel %vm1015_vm6, %v562_v20, %v563_v19  ;;  %v57_v34 = vsel %vm1015_vm6, %v563_v19, %v562_v20  ;;  %v83_v46 = vsel %vm1013_vm5, %v573_v17, %v572_v18 }
  0x7a   :  { %v576_v22 = vpop.permute.xlu1 %575  ;;  %v566_v23 = vpop.permute.xlu0 %565  ;;  %vm644_vm5 = vmmov 1  }
  0x7b   :  { %v578_v25 = vunpack.i.h.bf16 %v576_v22  ;;  %v577_v26 = vunpack.i.l.bf16 %v576_v22  ;;  %v568_v27 = vunpack.i.h.bf16 %v566_v23  ;;  %v567_v28 = vunpack.i.l.bf16 %v566_v23  ;;  %vm830_vm2 = vmpackc.low %vm738_vm7, %vm644_vm5 }
  0x7c   :  { %vm853_vm6 = vmpackc.low %vm748_vm11, %vm644_vm5 }
  0x7d   :  { %v95_v32 = vsel %vm1012_vm8, %v577_v26, %v578_v25  ;;  %v69_v33 = vsel %vm1011_vm9, %v567_v28, %v568_v27  ;;  %v70_v35 = vsel %vm1011_vm9, %v568_v27, %v567_v28  ;;  %vm793_vm9 = vmpackc.low %vm718_vm1, %vm42_vm14  ;;  %v96_v47 = vsel %vm1012_vm8, %v578_v25, %v577_v26 }
  0x7e   :  { %v500_v37 = vpack.c.bf16 %v69_v33, %v56_v31  ;;  %v503_v38 = vpack.c.bf16 %v70_v35, %v57_v34  ;;  %v581_v39 = vpop.permute.xlu0 %580  ;;  %v586_v40 = vpop.permute.xlu1 %585  ;;  %v506_v48 = vpack.c.bf16 %v95_v32, %v82_v30  ;;  %vm818_vm14 = vmpackc.low %vm728_vm3, %vm41_vm0  ;;  %vm1017_vm8 = vcmp.lt.s32.totalorder %v709_v5, 112 }
  0x7f   :  { %v583_v41 = vunpack.i.h.bf16 %v581_v39  ;;  %v582_v42 = vunpack.i.l.bf16 %v581_v39  ;;  %v588_v44 = vunpack.i.h.bf16 %v586_v40  ;;  %v587_v45 = vunpack.i.l.bf16 %v586_v40  ;;  %vm46_vm0 = vmand %vm803_vm10, %vm718_vm1 }
  0x80   :  { %502 = vmatprep.subr.msk.bf16.mxu0 %vm754_vm12, %v500_v37  ;;  %v509_v56 = vpack.c.bf16 %v96_v47, %v83_v46  ;;  %vm865_vm1 = vmpackc.low %vm803_vm10, %vm46_vm0  ;;  %v645_v31 = vmov 0  }
  0x81   :  { %505 = vmatpush1.bf16.msk.msra.mxu0 %vm782_vm15, %v503_v38  ;;  %v109_v50 = vsel %vm1014_vm13, %v583_v41, %v582_v42  ;;  %v108_v52 = vsel %vm1014_vm13, %v582_v42, %v583_v41  ;;  %v122_v57 = vsel %vm1016_vm4, %v588_v44, %v587_v45  ;;  %vm842_vm13 = vcmp.le.s32.totalorder %v29_v9, 14  ;;  %594 = vset.pattern.permute.xlu0 %v645_v31  ;;  %v231_v41 = vld [vmem:[%s1005_s2] sm:$0xff] }
  0x82   :  { %v512_v53 = vpack.c.bf16 %v109_v50, %v694_v1  ;;  %508 = vmatprep.subr.msk.bf16.mxu0 %vm793_vm9, %v506_v48  ;;  %v591_v54 = vpop.permute.xlu0 %590  ;;  %v515_v61 = vpack.c.bf16 %v108_v52, %v689_v0  ;;  %v121_v2 = vsel %vm1016_vm4, %v587_v45, %v588_v44  ;;  %vm45_vm5 = vmand %vm842_vm13, %vm728_vm3  ;;  %v143_v7 = vpop.permute.xlu1 %142  ;;  %vm1021_vm4 = vcmp.lt.s32.totalorder %v709_v5, 111  ;;  %595 = vset.pattern.permute.xlu1 %v645_v31  ;;  %v232_v45 = vld [vmem:[%s1006_s3] sm:$0xff] }
  0x83   :  { %v593_v58 = vunpack.i.h.bf16 %v591_v54  ;;  %v592_v59 = vunpack.i.l.bf16 %v591_v54  ;;  %vm880_vm0 = vmpackc.low %vm842_vm13, %vm45_vm5 }
  0x84   :  { %vm1020_vm3 = vmand %vm803_vm10, %vm738_vm7 }
  0x85   :  { %511 = vmatpush1.bf16.msk.msra.mxu0 %vm818_vm14, %v509_v56  ;;  %v135_v62 = vsel %vm1017_vm8, %v593_v58, %v592_v59  ;;  %v134_v3 = vsel %vm1017_vm8, %v592_v59, %v593_v58  ;;  %vm1019_vm5 = vmand %vm842_vm13, %vm748_vm11  ;;  %vm1018_vm8 = vcmask 588800  }
  0x86   :  { %v518_v4 = vpack.c.bf16 %v135_v62, %v122_v57  ;;  %514 = vmatprep.subr.msk.bf16.mxu0 %vm830_vm2, %v512_v53  ;;  %v145_v8 = vpop.permute.xlu0 %144  ;;  %v521_v9 = vpack.c.bf16 %v134_v3, %v121_v2 }
  0x87   :  { %v148_v11 = vsel %vm1021_vm4, %v145_v8, %v143_v7  ;;  %v147_v12 = vsel %vm1021_vm4, %v143_v7, %v145_v8 }
  0x89   :  { %517 = vmatpush1.bf16.msk.msra.mxu0 %vm853_vm6, %v515_v61 }
  0x8a   :  { %520 = vmatprep.subr.msk.bf16.mxu0 %vm865_vm1, %v518_v4 }
  0x8d   :  { %523 = vmatpush1.bf16.msk.msra.mxu0 %vm880_vm0, %v521_v9 }
  0x8e   :  { %480 = vmatprep.subr.msk.mxu0 %vm1020_vm3, %v148_v11 }
  0x91   :  { %481 = vmatpush1.msk.msra.mxu0 %vm1019_vm5, %v147_v12  ;;  %vm1055_vm5 = vcmp.lt.s32.totalorder %v709_v5, 16 }
  0x92   :  { %482 = vmatmul.mubr.msk.f32.vlgmr.msra.gmra.mrb[0].mxu0 %vm1018_vm8, %v155_v13  ;;  %vm1054_vm8 = vcmp.lt.s32.totalorder %v709_v5, 17  ;;  %vm1057_vm4 = vmmov %vm1055_vm5 }
  0x93   :  { %vm1056_vm3 = vmmov %vm1054_vm8 }
 0x165   :  { %v226_v14 = vpop.f32.mrb[0].mxu0 }
 0x166   :  { %v228_v15 = vpop.f32.mrb[1].mxu0  ;;  %v235_v16 = vrot.slane %v226_v14, 4  ;;  %v233_v17 = vmul.f32 %v226_v14, %v226_v14 }
 0x167   :  { %v234_v18 = vmul.f32 %v228_v15, %v228_v15  ;;  %v236_v19 = vrot.slane %v228_v15, 4 }
 0x168   :  { %v237_v20 = vadd.f32 %v235_v16, %v226_v14  ;;  %v239_v22 = vrot.slane %v233_v17, 4 }
 0x169   :  { %v238_v23 = vadd.f32 %v236_v19, %v228_v15  ;;  %v240_v25 = vrot.slane %v234_v18, 4 }
 0x16a   :  { %v241_v26 = vadd.f32 %v239_v22, %v233_v17 }
 0x16b   :  { %v243_v27 = vadd.f32 %v238_v23, %v237_v20  ;;  %v242_v28 = vadd.f32 %v240_v25, %v234_v18 }
 0x16d   :  { %244 = vadd.xlane.f32.xlu1 %v243_v27  ;;  %v247_v30 = vadd.f32 %v242_v28, %v241_v26 }
 0x16f   :  { %248 = vadd.xlane.f32.xlu0 %v247_v30 }
 0x1fa   :  { %v245_v32 = vpop.xlane.xlu1 %244 }
 0x1fb   :  { %v246_v33 = vmul.f32 0.001953125, %v245_v32 }
 0x1fc   :  { %v249_v34 = vpop.xlane.xlu0 %248 }
 0x1fd   :  { %v251_v35 = vmul.f32 %v246_v33, %v246_v33  ;;  %v250_v37 = vmul.f32 0.001953125, %v249_v34 }
 0x1ff   :  { %v252_v38 = vsub.f32 %v250_v37, %v251_v35 }
 0x201   :  { %v253_v39 = vmax.f32 %v252_v38, 0.0 }
 0x203   :  { %v254_v40 = vadd.f32 1e-05, %v253_v39 }
 0x205   :  { %631 = vrsqrt.f32 %v254_v40 }
 0x20f   :  { %v632_v42 = vpop.eup %631 }
 0x210   :  { %v256_v44 = vmul.f32 %v632_v42, %v231_v41 }
 0x212   :  { %261 = vperm.xlu0 %594, %v256_v44   ;;  %v257_v46 = vmul.f32 %v256_v44, %v246_v33 }
 0x214   :  { %v258_v47 = vsub.f32 %v232_v45, %v257_v46 }
 0x216   :  { %268 = vperm.xlu1 %595, %v258_v47  }
 0x291   :  { %v262_v48 = vpop.permute.xlu0 %261 }
 0x292   :  { %v264_v50 = vmul.f32 %v262_v48, %v226_v14  ;;  %v265_v52 = vmul.f32 %v262_v48, %v228_v15  ;;  %v339_v48 = vld [vmem:[%s1007_s4] sm:$0xff] }
 0x295   :  { %v269_v53 = vpop.permute.xlu1 %268 }
 0x296   :  { %v271_v54 = vadd.f32 %v269_v53, %v264_v50  ;;  %v272_v56 = vadd.f32 %v269_v53, %v265_v52 }
 0x298   :  { %v273_v57 = vmax.f32 %v271_v54, 0.0  ;;  %v274_v58 = vmax.f32 %v272_v56, 0.0 }
 0x29a   :  { %331 = vrot.lane.b32.xlu0 %v273_v57, %s642_s11  ;;  %v596_v59 = vpack.i.bf16 %v274_v58, %v273_v57 }
 0x29c   :  { %597 = vrot.lane.b32.xlu1 %v596_v59, %s636_s29 }
 0x2a0   :  { %602 = vrot.lane.b32.xlu1 %v596_v59, %s638_s8 }
 0x2a4   :  { %607 = vrot.lane.b32.xlu1 %v596_v59, %s635_s28 }
 0x2a8   :  { %612 = vrot.lane.b32.xlu1 %v596_v59, %s637_s30 }
 0x2ac   :  { %617 = vrot.lane.b32.xlu1 %v596_v59, %s639_s9 }
 0x2b0   :  { %622 = vrot.lane.b32.xlu1 %v596_v59, %s640_s0 }
 0x2b4   :  { %627 = vrot.lane.b32.xlu1 %v596_v59, %s641_s10 }
 0x2b8   :  { %333 = vrot.lane.b32.xlu1 %v274_v58, %s642_s11 }
 0x30c   :  { %v332_v63 = vpop.permute.xlu0 %331 }
 0x30e   :  { %v598_v61 = vpop.permute.xlu1 %597 }
 0x30f   :  { %v600_v62 = vunpack.i.h.bf16 %v598_v61  ;;  %v599_v2 = vunpack.i.l.bf16 %v598_v61 }
 0x311   :  { %v279_v8 = vsel %vm1054_vm8, %v599_v2, %v600_v62  ;;  %v280_v11 = vsel %vm1056_vm3, %v600_v62, %v599_v2  ;;  %vm1058_vm8 = vcmp.lt.s32.totalorder %v709_v5, 15 }
 0x312   :  { %v603_v3 = vpop.permute.xlu1 %602  ;;  %vm1059_vm3 = vmmov %vm1058_vm8 }
 0x313   :  { %v605_v4 = vunpack.i.h.bf16 %v603_v3  ;;  %v604_v7 = vunpack.i.l.bf16 %v603_v3 }
 0x315   :  { %v287_v9 = vsel %vm1055_vm5, %v604_v7, %v605_v4  ;;  %v288_v12 = vsel %vm1057_vm4, %v605_v4, %v604_v7  ;;  %vm1060_vm4 = vcmp.lt.s32.totalorder %v709_v5, 1 }
 0x316   :  { %v608_v13 = vpop.permute.xlu1 %607  ;;  %v524_v14 = vpack.c.bf16 %v287_v9, %v279_v8  ;;  %v527_v15 = vpack.c.bf16 %v288_v12, %v280_v11  ;;  %vm1061_vm5 = vmmov %vm1060_vm4  ;;  %v414_v11 = vld [vmem:[%s1008_s5] sm:$0xff] }
 0x317   :  { %v610_v16 = vunpack.i.h.bf16 %v608_v13  ;;  %v609_v17 = vunpack.i.l.bf16 %v608_v13 }
 0x318   :  { %526 = vmatprep.subr.msk.bf16.mxu1 %vm754_vm12, %v524_v14  ;;  %vm1062_vm12 = vcmp.lt.s32.totalorder %v709_v5, 127  ;;  %v415_v14 = vld [vmem:[%s1009_s6] sm:$0xff] }
 0x319   :  { %529 = vmatpush1.bf16.msk.msra.mxu1 %vm782_vm15, %v527_v15  ;;  %v295_v22 = vsel %vm1058_vm8, %v609_v17, %v610_v16  ;;  %v296_v23 = vsel %vm1059_vm3, %v610_v16, %v609_v17  ;;  %vm1063_vm15 = vmmov %vm1062_vm12 }
 0x31a   :  { %v613_v18 = vpop.permute.xlu1 %612 }
 0x31b   :  { %v615_v19 = vunpack.i.h.bf16 %v613_v18  ;;  %v614_v20 = vunpack.i.l.bf16 %v613_v18 }
 0x31d   :  { %v303_v25 = vsel %vm1060_vm4, %v614_v20, %v615_v19  ;;  %v304_v29 = vsel %vm1061_vm5, %v615_v19, %v614_v20 }
 0x31e   :  { %v530_v26 = vpack.c.bf16 %v303_v25, %v295_v22  ;;  %v533_v27 = vpack.c.bf16 %v304_v29, %v296_v23  ;;  %v618_v28 = vpop.permute.xlu1 %617 }
 0x31f   :  { %v620_v36 = vunpack.i.h.bf16 %v618_v28  ;;  %v619_v30 = vunpack.i.l.bf16 %v618_v28 }
 0x320   :  { %532 = vmatprep.subr.msk.bf16.mxu1 %vm793_vm9, %v530_v26  ;;  %vm1064_vm9 = vcmp.lt.s32.totalorder %v709_v5, 113 }
 0x321   :  { %v311_v31 = vsel %vm1062_vm12, %v619_v30, %v620_v36  ;;  %v312_v32 = vsel %vm1063_vm15, %v620_v36, %v619_v30  ;;  %535 = vmatpush1.bf16.msk.msra.mxu1 %vm818_vm14, %v533_v27  ;;  %vm1065_vm8 = vmmov %vm1064_vm9  ;;  %vm1066_vm14 = vcmp.lt.s32.totalorder %v709_v5, 112 }
 0x322   :  { %v536_v33 = vpack.c.bf16 %v312_v32, %v274_v58  ;;  %v539_v34 = vpack.c.bf16 %v311_v31, %v273_v57  ;;  %v623_v35 = vpop.permute.xlu1 %622  ;;  %vm1067_vm3 = vmmov %vm1066_vm14 }
 0x323   :  { %v625_v37 = vunpack.i.h.bf16 %v623_v35  ;;  %v624_v38 = vunpack.i.l.bf16 %v623_v35 }
 0x324   :  { %538 = vmatprep.subr.msk.bf16.mxu1 %vm830_vm2, %v536_v33  ;;  %vm1069_vm2 = vmand %vm803_vm10, %vm738_vm7 }
 0x325   :  { %541 = vmatpush1.bf16.msk.msra.mxu1 %vm853_vm6, %v539_v34  ;;  %v319_v41 = vsel %vm1064_vm9, %v624_v38, %v625_v37  ;;  %v320_v51 = vsel %vm1065_vm8, %v625_v37, %v624_v38  ;;  %vm1068_vm6 = vcmp.lt.s32.totalorder %v709_v5, 111 }
 0x326   :  { %v628_v43 = vpop.permute.xlu1 %627  ;;  %vm1070_vm4 = vmmov %vm1068_vm6 }
 0x327   :  { %v630_v39 = vunpack.i.h.bf16 %v628_v43  ;;  %v629_v40 = vunpack.i.l.bf16 %v628_v43 }
 0x329   :  { %v327_v42 = vsel %vm1066_vm14, %v629_v40, %v630_v39  ;;  %v328_v55 = vsel %vm1067_vm3, %v630_v39, %v629_v40 }
 0x32a   :  { %v542_v44 = vpack.c.bf16 %v328_v55, %v320_v51  ;;  %v545_v45 = vpack.c.bf16 %v327_v42, %v319_v41  ;;  %v334_v46 = vpop.permute.xlu1 %333 }
 0x32b   :  { %v336_v47 = vsel %vm1068_vm6, %v334_v46, %v332_v63  ;;  %v335_v6 = vsel %vm1070_vm4, %v332_v63, %v334_v46 }
 0x32c   :  { %544 = vmatprep.subr.msk.bf16.mxu1 %vm865_vm1, %v542_v44  ;;  %vm1071_vm1 = vmand %vm842_vm13, %vm748_vm11 }
 0x32d   :  { %547 = vmatpush1.bf16.msk.msra.mxu1 %vm880_vm0, %v545_v45  ;;  %vm1072_vm0 = vcmask 588800  }
 0x32e   :  { %497 = vmatprep.subr.msk.mxu1 %vm1069_vm2, %v336_v47 }
 0x331   :  { %498 = vmatpush1.msk.msra.mxu1 %vm1071_vm1, %v335_v6 }
 0x332   :  { %499 = vmatmul.mubr.msk.f32.vlgmr.msra.gmra.mrb[0].mxu1 %vm1072_vm0, %v339_v48 }
 0x405   :  { %v409_v49 = vpop.f32.mrb[0].mxu1 }
 0x406   :  { %v411_v10 = vpop.f32.mrb[1].mxu1  ;;  %v418_v21 = vrot.slane %v409_v49, 4  ;;  %v416_v50 = vmul.f32 %v409_v49, %v409_v49 }
 0x407   :  { %v417_v52 = vmul.f32 %v411_v10, %v411_v10  ;;  %v419_v53 = vrot.slane %v411_v10, 4 }
 0x408   :  { %v420_v54 = vadd.f32 %v418_v21, %v409_v49  ;;  %v422_v56 = vrot.slane %v416_v50, 4 }
 0x409   :  { %v421_v57 = vadd.f32 %v419_v53, %v411_v10  ;;  %v423_v58 = vrot.slane %v417_v52, 4 }
 0x40a   :  { %v424_v5 = vadd.f32 %v422_v56, %v416_v50 }
 0x40b   :  { %v426_v59 = vadd.f32 %v421_v57, %v420_v54  ;;  %v425_v61 = vadd.f32 %v423_v58, %v417_v52 }
 0x40d   :  { %427 = vadd.xlane.f32.xlu0 %v426_v59  ;;  %v430_v60 = vadd.f32 %v425_v61, %v424_v5 }
 0x40f   :  { %431 = vadd.xlane.f32.xlu1 %v430_v60 }
 0x49a   :  { %v428_v24 = vpop.xlane.xlu0 %427 }
 0x49b   :  { %v429_v62 = vmul.f32 0.001953125, %v428_v24 }
 0x49c   :  { %v432_v2 = vpop.xlane.xlu1 %431 }
 0x49d   :  { %v434_v3 = vmul.f32 %v429_v62, %v429_v62  ;;  %v433_v4 = vmul.f32 0.001953125, %v432_v2 }
 0x49f   :  { %v435_v7 = vsub.f32 %v433_v4, %v434_v3 }
 0x4a1   :  { %v436_v8 = vmax.f32 %v435_v7, 0.0 }
 0x4a3   :  { %v437_v9 = vadd.f32 1e-05, %v436_v8 }
 0x4a5   :  { %633 = vrsqrt.f32 %v437_v9 }
 0x4af   :  { %v634_v12 = vpop.eup %633 }
 0x4b0   :  { %v439_v13 = vmul.f32 %v634_v12, %v414_v11 }
 0x4b2   :  { %444 = vperm.xlu0 %594, %v439_v13   ;;  %v440_v15 = vmul.f32 %v439_v13, %v429_v62 }
 0x4b4   :  { %v441_v16 = vsub.f32 %v415_v14, %v440_v15 }
 0x4b6   :  { %451 = vperm.xlu1 %595, %v441_v16  }
 0x531   :  { %v445_v17 = vpop.permute.xlu0 %444 }
 0x532   :  { %v447_v18 = vmul.f32 %v445_v17, %v409_v49  ;;  %v448_v19 = vmul.f32 %v445_v17, %v411_v10 }
 0x535   :  { %v452_v20 = vpop.permute.xlu1 %451 }
 0x536   :  { %v454_v22 = vadd.f32 %v452_v20, %v447_v18  ;;  %v455_v23 = vadd.f32 %v452_v20, %v448_v19 }
 0x538   :  { %v456_v25 = vadd.f32 %v454_v22, %v689_v0  ;;  %v457_v29 = vadd.f32 %v455_v23, %v694_v1 }
 0x53a   :  { %v458_v26 = vmax.f32 %v456_v25, 0.0  ;;  %v459_v27 = vmax.f32 %v457_v29, 0.0 }
 0x53c   :  { %460 = vst [vmem:[%s1010_s7] sm:$0xff] %v458_v26  ;;  %461 = vst [vmem:[%s1010_s7 + $0x8] sm:$0xff] %v459_v27 }

</bundles_post_ra>
